<compile_context>
chip_gen: v7x
topology: tpu7x:2x2x1
jax: 0.10.0
libtpu: 0.0.40
codegen_flags: <defaults>
</compile_context>

<pallas_src>
import jax
import jax.numpy as jnp
from jax.experimental import pallas as pl
from jax.experimental.pallas import tpu as pltpu

# Deterministic in-script "dataset" just to fix vocab_size, mirroring
#   chars = sorted(list(set(text))); vocab_size = len(chars)
text = "the quick brown fox jumps over the lazy dog, bigram language model!"
chars = sorted(list(set(text)))
vocab_size = len(chars)

_LANE = 128
_SUB = 8
_MAX_TOKEN_TILE = 256


def _round_up(x, m):
    return ((x + m - 1) // m) * m


def bigram_forward(idx, table, targets=None):
    """Pallas implementation of BigramLanguageModel.forward.

    Returns (logits, loss):
      - targets is None : logits (B, T, V), loss None
      - targets given   : logits (B*T, V),  loss scalar f32
    (matches the PyTorch module's shape semantics)
    """
    B, T = idx.shape
    V = table.shape[0]
    VP = _round_up(V, _LANE)                 # lane-dense vocab axis
    BT = B * T
    TILE = min(_round_up(BT, _SUB), _MAX_TOKEN_TILE)   # token rows per step
    BTP = _round_up(BT, TILE)
    n_tiles = BTP // TILE

    idx_col = jnp.pad(idx.reshape(BT).astype(jnp.int32),
                      (0, BTP - BT)).reshape(BTP, 1)
    # Pad table to (VP, VP): padded rows are never selected (idx < V), padded
    # columns are masked out of the softmax / NLL math inside the kernel.
    table_p = jnp.pad(table.astype(jnp.float32),
                      ((0, VP - V), (0, VP - V)))

    if targets is None:
        # Inference path: pure embedding gather via one-hot MXU matmul.
        def _logits_kernel(idx_ref, table_ref, logits_ref):
            lane = jax.lax.broadcasted_iota(jnp.int32, (TILE, VP), 1)
            onehot = (lane == idx_ref[...]).astype(jnp.float32)
            logits_ref[...] = jnp.dot(onehot, table_ref[...],
                                      preferred_element_type=jnp.float32)

        logits_p = pl.pallas_call(
            _logits_kernel,
            out_shape=jax.ShapeDtypeStruct((BTP, VP), jnp.float32),
            grid=(n_tiles,),
            in_specs=[
                pl.BlockSpec((TILE, 1), lambda i: (i, 0)),
                pl.BlockSpec((VP, VP), lambda i: (0, 0)),   # table resident
            ],
            out_specs=pl.BlockSpec((TILE, VP), lambda i: (i, 0)),
            compiler_params=pltpu.CompilerParams(
                dimension_semantics=("parallel",)),
        )(idx_col, table_p)
        return logits_p[:BT, :V].reshape(B, T, V), None

    # Training path: gather + fused cross-entropy reduction.
    tgt_col = jnp.pad(targets.reshape(BT).astype(jnp.int32),
                      (0, BTP - BT)).reshape(BTP, 1)

    def _loss_kernel(idx_ref, tgt_ref, table_ref, logits_ref, loss_ref):
        i = pl.program_id(0)

        @pl.when(i == 0)
        def _():
            loss_ref[...] = jnp.zeros_like(loss_ref)

        lane = jax.lax.broadcasted_iota(jnp.int32, (TILE, VP), 1)
        onehot = (lane == idx_ref[...]).astype(jnp.float32)       # (TILE, VP)
        logits = jnp.dot(onehot, table_ref[...],
                         preferred_element_type=jnp.float32)      # (TILE, VP)
        logits_ref[...] = logits                                  # lane-dense

        # Mask padded lanes out of the softmax / NLL math.
        masked = jnp.where(lane < V, logits, -1e30)
        m = jnp.max(masked, axis=-1, keepdims=True)               # (TILE, 1)
        lse = jnp.log(jnp.sum(jnp.exp(masked - m), axis=-1,
                              keepdims=True)) + m                 # (TILE, 1)
        tgt_logit = jnp.sum(jnp.where(lane == tgt_ref[...], logits, 0.0),
                            axis=-1, keepdims=True)               # (TILE, 1)

        # Mask padded token rows out of the loss sum.
        row = jax.lax.broadcasted_iota(jnp.int32, (TILE, 1), 0) + i * TILE
        nll = jnp.where(row < BT, lse - tgt_logit, 0.0)
        loss_ref[...] += jnp.sum(nll, axis=0, keepdims=True)      # (1, 1)

        @pl.when(i == pl.num_programs(0) - 1)
        def _():
            loss_ref[...] = loss_ref[...] * (1.0 / BT)

    logits_p, loss = pl.pallas_call(
        _loss_kernel,
        out_shape=(
            jax.ShapeDtypeStruct((BTP, VP), jnp.float32),
            jax.ShapeDtypeStruct((1, 1), jnp.float32),
        ),
        grid=(n_tiles,),
        in_specs=[
            pl.BlockSpec((TILE, 1), lambda i: (i, 0)),
            pl.BlockSpec((TILE, 1), lambda i: (i, 0)),
            pl.BlockSpec((VP, VP), lambda i: (0, 0)),       # table resident
        ],
        out_specs=(
            pl.BlockSpec((TILE, VP), lambda i: (i, 0)),
            pl.BlockSpec((1, 1), lambda i: (0, 0)),         # loss accumulator
        ),
        # The grid axis carries the loss accumulator -> reduction axis.
        compiler_params=pltpu.CompilerParams(
            dimension_semantics=("arbitrary",)),
    )(idx_col, tgt_col, table_p)

    return logits_p[:BT, :V], loss[0, 0]


def _reference_forward(idx, table, targets):
    B, T = idx.shape
    logits = table[idx]                            # (B, T, V)
    logits = logits.reshape(B * T, -1)
    tgt = targets.reshape(B * T)
    lse = jax.nn.logsumexp(logits, axis=-1)
    nll = lse - jnp.take_along_axis(logits, tgt[:, None], axis=-1)[:, 0]
    return logits, jnp.mean(nll)


# TODO(synk): generate() (autoregressive multinomial sampling loop) has no
# single-kernel Pallas equivalent here; only the forward pass is implemented.

if __name__ == "__main__":
    key = jax.random.PRNGKey(0)
    k_tab, k_idx, k_tgt = jax.random.split(key, 3)

    B, T = 2, 8
    V = vocab_size

    # nn.Embedding(vocab_size, vocab_size) default init: N(0, 1)
    table = jax.random.normal(k_tab, (V, V), dtype=jnp.float32)
    idx = jax.random.randint(k_idx, (B, T), 0, V, dtype=jnp.int32)
    targets = jax.random.randint(k_tgt, (B, T), 0, V, dtype=jnp.int32)

    logits, loss = bigram_forward(idx, table, targets)
    jax.block_until_ready((logits, loss))

    ref_logits, ref_loss = _reference_forward(idx, table, targets)
    assert logits.shape == (B * T, V)
    assert jnp.allclose(logits, ref_logits, atol=1e-4), "logits mismatch"
    assert jnp.allclose(loss, ref_loss, atol=1e-4), "loss mismatch"

    # targets=None path (logits kept as (B, T, V), loss None, no loss compute)
    logits_nt, loss_nt = bigram_forward(idx, table, None)
    jax.block_until_ready(logits_nt)
    assert logits_nt.shape == (B, T, V) and loss_nt is None
    assert jnp.allclose(logits_nt.reshape(B * T, V), ref_logits, atol=1e-4)

    print("KERNEL_OK")
</pallas_src>

<mosaic_0001>
module attributes {stable_mosaic.version = 11 : i64} {
  func.func @_loss_kernel(%arg0: i32, %arg1: memref<16x1xi32, #tpu.memory_space<vmem>>, %arg2: memref<16x1xi32, #tpu.memory_space<vmem>>, %arg3: memref<128x128xf32, #tpu.memory_space<vmem>>, %arg4: memref<16x128xf32, #tpu.memory_space<vmem>>, %arg5: memref<1x1xf32, #tpu.memory_space<vmem>>) attributes {dimension_semantics = [#tpu.dimension_semantics<arbitrary>], iteration_bounds = array<i64: 1>, scalar_prefetch = 0 : i64, scratch_operands = 0 : i64, tpu.core_type = #tpu.core_type<tc>, window_params = [{transform_indices = @transform_0, window_bounds = array<i64: 16, 1>}, {transform_indices = @transform_1, window_bounds = array<i64: 16, 1>}, {pipeline_mode = #tpu.pipeline_mode<synchronous>, transform_indices = @transform_2, window_bounds = array<i64: 128, 128>}, {transform_indices = @transform_3, window_bounds = array<i64: 16, 128>}, {pipeline_mode = #tpu.pipeline_mode<synchronous>, transform_indices = @transform_4, window_bounds = array<i64: 1, 1>}]} {
    %c0_i32 = arith.constant 0 : i32
    %0 = arith.cmpi eq, %arg0, %c0_i32 : i32
    %1 = arith.extui %0 : i1 to i32
    %c0_i32_0 = arith.constant 0 : i32
    %2 = arith.cmpi ne, %1, %c0_i32_0 : i32
    scf.if %2 {
      %cst_22 = arith.constant 0.000000e+00 : f32
      %49 = vector.broadcast %cst_22 : f32 to vector<1x1xf32>
      %c0_23 = arith.constant 0 : index
      %c0_24 = arith.constant 0 : index
      %50 = vector.load %arg5[%c0_23, %c0_24] : memref<1x1xf32, #tpu.memory_space<vmem>>, vector<1x1xf32>
      tpu.vector_store %arg5[%c0_23, %c0_24], %49 {strides = array<i32>} : memref<1x1xf32, #tpu.memory_space<vmem>>, vector<1x1xf32>,
    } else {
    }
    %3 = tpu.iota {dimensions = array<i32: 1>} : vector<16x128xi32>
    %c0 = arith.constant 0 : index
    %c0_1 = arith.constant 0 : index
    %4 = vector.load %arg1[%c0, %c0_1] : memref<16x1xi32, #tpu.memory_space<vmem>>, vector<16x1xi32>
    %5 = vector.broadcast %4 : vector<16x1xi32> to vector<16x128xi32>
    %6 = arith.cmpi eq, %3, %5 : vector<16x128xi32>
    %7 = arith.extui %6 : vector<16x128xi1> to vector<16x128xi32>
    %8 = arith.sitofp %7 : vector<16x128xi32> to vector<16x128xf32>
    %c0_2 = arith.constant 0 : index
    %c0_3 = arith.constant 0 : index
    %9 = vector.load %arg3[%c0_2, %c0_3] : memref<128x128xf32, #tpu.memory_space<vmem>>, vector<128x128xf32>
    %cst = arith.constant dense<0.000000e+00> : vector<16x128xf32>
    %10 = tpu.matmul %8, %9, %cst {dimension_numbers = #tpu.dot_dimension_numbers<[1], [0], [0], [1], [0, 0, 1, 1], [], []>} : vector<16x128xf32>, vector<128x128xf32>, vector<16x128xf32> -> vector<16x128xf32>
    %c0_4 = arith.constant 0 : index
    %c0_5 = arith.constant 0 : index
    %11 = vector.load %arg4[%c0_4, %c0_5] : memref<16x128xf32, #tpu.memory_space<vmem>>, vector<16x128xf32>
    tpu.vector_store %arg4[%c0_4, %c0_5], %10 {strides = array<i32>} : memref<16x128xf32, #tpu.memory_space<vmem>>, vector<16x128xf32>,
    %c29_i32 = arith.constant 29 : i32
    %12 = vector.broadcast %c29_i32 : i32 to vector<16x128xi32>
    %13 = arith.cmpi slt, %3, %12 : vector<16x128xi32>
    %cst_6 = arith.constant -1.000000e+30 : f32
    %14 = vector.broadcast %cst_6 : f32 to vector<16x128xf32>
    %15 = arith.select %13, %10, %14 : vector<16x128xi1>, vector<16x128xf32>
    %cst_7 = arith.constant dense<0xFF800000> : vector<16xf32>
    %16 = vector.multi_reduction <maximumf>, %15, %cst_7 [1] : vector<16x128xf32> to vector<16xf32>
    %17 = vector.shape_cast %16 : vector<16xf32> to vector<16x1xf32>
    %18 = vector.broadcast %17 : vector<16x1xf32> to vector<16x128xf32>
    %19 = arith.subf %15, %18 : vector<16x128xf32>
    %20 = math.exp %19 : vector<16x128xf32>
    %cst_8 = arith.constant dense<0.000000e+00> : vector<16xf32>
    %21 = vector.multi_reduction <add>, %20, %cst_8 [1] : vector<16x128xf32> to vector<16xf32>
    %22 = vector.shape_cast %21 : vector<16xf32> to vector<16x1xf32>
    %23 = math.log %22 : vector<16x1xf32>
    %24 = arith.addf %23, %17 : vector<16x1xf32>
    %c0_9 = arith.constant 0 : index
    %c0_10 = arith.constant 0 : index
    %25 = vector.load %arg2[%c0_9, %c0_10] : memref<16x1xi32, #tpu.memory_space<vmem>>, vector<16x1xi32>
    %26 = vector.broadcast %25 : vector<16x1xi32> to vector<16x128xi32>
    %27 = arith.cmpi eq, %3, %26 : vector<16x128xi32>
    %cst_11 = arith.constant 0.000000e+00 : f32
    %28 = vector.broadcast %cst_11 : f32 to vector<16x128xf32>
    %29 = arith.select %27, %10, %28 : vector<16x128xi1>, vector<16x128xf32>
    %cst_12 = arith.constant dense<0.000000e+00> : vector<16xf32>
    %30 = vector.multi_reduction <add>, %29, %cst_12 [1] : vector<16x128xf32> to vector<16xf32>
    %31 = vector.shape_cast %30 : vector<16xf32> to vector<16x1xf32>
    %32 = tpu.iota {dimensions = array<i32: 0>} : vector<16x1xi32>
    %c16_i32 = arith.constant 16 : i32
    %33 = arith.muli %arg0, %c16_i32 : i32
    %34 = vector.broadcast %33 : i32 to vector<16x1xi32>
    %35 = arith.addi %32, %34 : vector<16x1xi32>
    %c16_i32_13 = arith.constant 16 : i32
    %36 = vector.broadcast %c16_i32_13 : i32 to vector<16x1xi32>
    %37 = arith.cmpi slt, %35, %36 : vector<16x1xi32>
    %38 = arith.subf %24, %31 : vector<16x1xf32>
    %cst_14 = arith.constant 0.000000e+00 : f32
    %39 = vector.broadcast %cst_14 : f32 to vector<16x1xf32>
    %40 = arith.select %37, %38, %39 : vector<16x1xi1>, vector<16x1xf32>
    %c0_15 = arith.constant 0 : index
    %c0_16 = arith.constant 0 : index
    %41 = vector.load %arg5[%c0_15, %c0_16] : memref<1x1xf32, #tpu.memory_space<vmem>>, vector<1x1xf32>
    %cst_17 = arith.constant dense<0.000000e+00> : vector<1xf32>
    %42 = vector.multi_reduction <add>, %40, %cst_17 [0] : vector<16x1xf32> to vector<1xf32>
    %43 = vector.shape_cast %42 : vector<1xf32> to vector<1x1xf32>
    %44 = arith.addf %41, %43 : vector<1x1xf32>
    %c0_18 = arith.constant 0 : index
    %c0_19 = arith.constant 0 : index
    %45 = vector.load %arg5[%c0_18, %c0_19] : memref<1x1xf32, #tpu.memory_space<vmem>>, vector<1x1xf32>
    tpu.vector_store %arg5[%c0_18, %c0_19], %44 {strides = array<i32>} : memref<1x1xf32, #tpu.memory_space<vmem>>, vector<1x1xf32>,
    %c0_i32_20 = arith.constant 0 : i32
    %46 = arith.cmpi eq, %arg0, %c0_i32_20 : i32
    %47 = arith.extui %46 : i1 to i32
    %c0_i32_21 = arith.constant 0 : i32
    %48 = arith.cmpi ne, %47, %c0_i32_21 : i32
    scf.if %48 {
      %c0_22 = arith.constant 0 : index
      %c0_23 = arith.constant 0 : index
      %49 = vector.load %arg5[%c0_22, %c0_23] : memref<1x1xf32, #tpu.memory_space<vmem>>, vector<1x1xf32>
      %cst_24 = arith.constant 6.250000e-02 : f32
      %50 = vector.broadcast %cst_24 : f32 to vector<1x1xf32>
      %51 = arith.mulf %49, %50 : vector<1x1xf32>
      %c0_25 = arith.constant 0 : index
      %c0_26 = arith.constant 0 : index
      %52 = vector.load %arg5[%c0_25, %c0_26] : memref<1x1xf32, #tpu.memory_space<vmem>>, vector<1x1xf32>
      tpu.vector_store %arg5[%c0_25, %c0_26], %51 {strides = array<i32>} : memref<1x1xf32, #tpu.memory_space<vmem>>, vector<1x1xf32>,
    } else {
    }
    return
  }
  func.func @transform_0(%arg0: i32) -> (i32, i32) {
    %c0_i32 = arith.constant 0 : i32
    %c0_i32_0 = arith.constant 0 : i32
    return %arg0, %c0_i32 : i32, i32
  }
  func.func @transform_1(%arg0: i32) -> (i32, i32) {
    %c0_i32 = arith.constant 0 : i32
    %c0_i32_0 = arith.constant 0 : i32
    return %arg0, %c0_i32 : i32, i32
  }
  func.func @transform_2(%arg0: i32) -> (i32, i32) {
    %c0_i32 = arith.constant 0 : i32
    %c0_i32_0 = arith.constant 0 : i32
    %c0_i32_1 = arith.constant 0 : i32
    return %c0_i32, %c0_i32_0 : i32, i32
  }
  func.func @transform_3(%arg0: i32) -> (i32, i32) {
    %c0_i32 = arith.constant 0 : i32
    %c0_i32_0 = arith.constant 0 : i32
    return %arg0, %c0_i32 : i32, i32
  }
  func.func @transform_4(%arg0: i32) -> (i32, i32) {
    %c0_i32 = arith.constant 0 : i32
    %c0_i32_0 = arith.constant 0 : i32
    %c0_i32_1 = arith.constant 0 : i32
    return %c0_i32, %c0_i32_0 : i32, i32
  }
}

</mosaic_0001>

<bundles_post_ra>
// kernel: tpu_custom_call.1
= control target key start
LH: loop header
LB: loop body
LE: loop exit
PB: predicated region body
PF: predicated region fallthrough
CT: control target
= control target key end

     0   :  { %10 = vsyncpa [#allocation3], 0  ;;  %s516_s0 = inlined_call_operand.vmem [shape: s32[16,1], index: 0, kind: input, shape index: {}]   ;;  %s517_s1 = inlined_call_operand.vmem [shape: s32[16,1], index: 1, kind: input, shape index: {}]   ;;  %s518_s2 = inlined_call_operand.hbm [shape: f32[128,128], index: 2, kind: input, shape index: {}]   ;;  %s519_s3 = inlined_call_operand.hbm [shape: f32[16,128], index: 3, kind: output, shape index: {0}]   ;;  %s520_s4 = inlined_call_operand.hbm [shape: f32[1,1], index: 4, kind: output, shape index: {1}]  }
   0x1   :  { %11 = vsyncpa [#allocation4], 0 }
   0x2   :  { %12 = vsyncpa [#allocation7], 0  ;;  %s426_s15 = smov [#allocation2]   ;;  %s354_s19 = scalar_lea.hbm %s518_s2, 2048 }
   0x3   :  { %s22_s16 = sshll.u32 %s426_s15, 4  ;;  %p355_p0 = scmp.ne.s32.totalorder %s518_s2, %s354_s19  ;;  %s23_s16 = int_to_ptr.vmem [resolvable:$true] %s22_s16 }
   0x4   :  { %p358_p1 = scmp.lt.u32.totalorder %s354_s19, %s518_s2 }
   0x6   :  { %p360_p2 = pnand %p358_p1, %p355_p0 }
   0x8   :  { %363 = shalt.err (!%p360_p2)
}
   0x9   :  { %s364_s24 = scalar_lea.vmem %s23_s16, 2048  ;;  %p369_p4 = scmp.lt.s32.totalorder %s23_s16, %s23_s16 }
   0xa   :  { %p365_p3 = scmp.ne.s32.totalorder %s23_s16, %s364_s24  ;;  %p370_p5 = scmp.lt.s32.totalorder %s364_s24, %s364_s24 }
   0xc   :  { %p371_p6 = por %p370_p5, %p369_p4 }
   0xe   :  { %p372_p7 = pnand %p371_p6, %p365_p3 }
  0x10   :  { %375 = shalt.err (!%p372_p7)
}
  0x11   :  { %s427_s25 = smov 128   ;;  %s428_s26 = smov 8  }
  0x12   :  { %28 = dma.hbm_to_vmem [thread:$0]  %s518_s2, 2048, %s23_s16, [#allocation3], %s427_s25, %s427_s25, %s428_s26  }
  0x13   :  { %420 = dma.done.wait [#allocation3], 2048  }
  0x14   :  { %421 = vsyncadd [#allocation3], 4294965248  ;;  %v429_v0 = vmov 0   ;;  %v40_v1 = vld [vmem:[%s516_s0] sm:$0xff]  ;;  %v55_v3 = vld [vmem:[#allocation2 + $0x8] sm:$0xff]  ;;  %v38_v28 = vlaneseq  ;;  %v430_v31 = vmov 1.0  }
  0x15   :  { %344 = vset.pattern.permute.xlu0 %v429_v0  ;;  %345 = vset.pattern.permute.xlu1 %v429_v0  ;;  %v54_v2 = vld [vmem:[#allocation2] sm:$0xff]  ;;  %v56_v4 = vld [vmem:[#allocation2 + $0x10] sm:$0xff]  ;;  %v41_v5 = vld [vmem:[%s516_s0 + $0x8] sm:$0xff]  ;;  %vm36_vm5 = vcmask 0   ;;  %v431_v50 = vmov 0.0  }
  0x16   :  { %43 = vperm.xlu0 %344, %v40_v1   ;;  %v304_v6 = vpack.c.bf16 %v55_v3, %v54_v2  ;;  %v57_v7 = vld [vmem:[#allocation2 + $0x18] sm:$0xff]  ;;  %v58_v9 = vld [vmem:[#allocation2 + $0x20] sm:$0xff]  ;;  %v59_v10 = vld [vmem:[#allocation2 + $0x28] sm:$0xff]  ;;  %v39_v29 = vand.u32 127, %v38_v28  ;;  %37 = vst.msk [vmem:[#allocation6] sm:$0x1] %vm36_vm5, %v431_v50 }
  0x17   :  { %v308_v8 = vpack.c.bf16 %v57_v7, %v56_v4  ;;  %v170_v11 = vld [vmem:[%s517_s1] sm:$0xff]  ;;  %v312_v12 = vpack.c.bf16 %v59_v10, %v58_v9  ;;  %v60_v13 = vld [vmem:[#allocation2 + $0x30] sm:$0xff]  ;;  %v61_v14 = vld [vmem:[#allocation2 + $0x38] sm:$0xff] }
  0x18   :  { %305 = vmatprep.subr.bf16.mxu0 %v304_v6  ;;  %v316_v15 = vpack.c.bf16 %v61_v14, %v60_v13  ;;  %v62_v16 = vld [vmem:[#allocation2 + $0x40] sm:$0xff]  ;;  %v63_v17 = vld [vmem:[#allocation2 + $0x48] sm:$0xff]  ;;  %v64_v19 = vld [vmem:[#allocation2 + $0x50] sm:$0xff]  ;;  %vm147_vm2 = vcmp.lt.s32.totalorder %v39_v29, 29 }
  0x19   :  { %307 = vmatpush3.bf16.msra.mxu0 %v304_v6  ;;  %v320_v18 = vpack.c.bf16 %v63_v17, %v62_v16  ;;  %v65_v20 = vld [vmem:[#allocation2 + $0x58] sm:$0xff]  ;;  %v66_v22 = vld [vmem:[#allocation2 + $0x60] sm:$0xff]  ;;  %v67_v23 = vld [vmem:[#allocation2 + $0x68] sm:$0xff] }
  0x1a   :  { %46 = vperm.xlu0 %344, %v41_v5   ;;  %309 = vmatprep.subr.bf16.mxu0 %v308_v8  ;;  %v324_v21 = vpack.c.bf16 %v65_v20, %v64_v19  ;;  %v328_v24 = vpack.c.bf16 %v67_v23, %v66_v22  ;;  %v68_v25 = vld [vmem:[#allocation2 + $0x70] sm:$0xff]  ;;  %v69_v26 = vld [vmem:[#allocation2 + $0x78] sm:$0xff]  ;;  %v171_v37 = vld [vmem:[%s517_s1 + $0x8] sm:$0xff]  ;;  %s432_s1 = smov [#allocation5]  }
  0x1b   :  { %v332_v27 = vpack.c.bf16 %v69_v26, %v68_v25  ;;  %s221_s9 = sshll.u32 %s432_s1, 4  ;;  %s222_s9 = int_to_ptr.vmem [resolvable:$true] %s221_s9 }
  0x1c   :  { %s376_s10 = scalar_lea.vmem %s222_s9, 256  ;;  %p381_p9 = scmp.lt.s32.totalorder %s222_s9, %s222_s9 }
  0x1d   :  { %311 = vmatpush3.bf16.msra.mxu0 %v308_v8  ;;  %p377_p8 = scmp.ne.s32.totalorder %s222_s9, %s376_s10  ;;  %p382_p10 = scmp.lt.s32.totalorder %s376_s10, %s376_s10 }
  0x1e   :  { %173 = vperm.xlu0 %344, %v170_v11   ;;  %313 = vmatprep.subr.bf16.mxu0 %v312_v12 }
  0x1f   :  { %p383_p11 = por %p382_p10, %p381_p9 }
  0x21   :  { %315 = vmatpush3.bf16.msra.mxu0 %v312_v12  ;;  %p384_p12 = pnand %p383_p11, %p377_p8 }
  0x22   :  { %317 = vmatprep.subr.bf16.mxu0 %v316_v15 }
  0x25   :  { %319 = vmatpush3.bf16.msra.mxu0 %v316_v15 }
  0x26   :  { %321 = vmatprep.subr.bf16.mxu0 %v320_v18 }
  0x29   :  { %323 = vmatpush3.bf16.msra.mxu0 %v320_v18 }
  0x2a   :  { %325 = vmatprep.subr.bf16.mxu0 %v324_v21 }
  0x2d   :  { %327 = vmatpush3.bf16.msra.mxu0 %v324_v21 }
  0x2e   :  { %329 = vmatprep.subr.bf16.mxu0 %v328_v24 }
  0x31   :  { %331 = vmatpush3.bf16.msra.mxu0 %v328_v24 }
  0x32   :  { %333 = vmatprep.subr.bf16.mxu0 %v332_v27 }
  0x35   :  { %335 = vmatpush3.bf16.msra.mxu0 %v332_v27 }
  0x95   :  { %v44_v30 = vpop.permute.xlu0 %43 }
  0x96   :  { %vm48_vm0 = vcmp.eq.s32.totalorder %v39_v29, %v44_v30 }
  0x97   :  { %301 = vmatprep.mubr.msk.f32.mxu0 %vm48_vm0, %v430_v31 }
  0x99   :  { %v47_v32 = vpop.permute.xlu0 %46 }
  0x9a   :  { %vm49_vm1 = vcmp.eq.s32.totalorder %v39_v29, %v47_v32 }
  0x9b   :  { %302 = vmatmul.mubr.msk.f32.vlgmr.msra.gmra.mrb[0].mxu0 %vm49_vm1, %v430_v31 }
  0x9d   :  { %v174_v46 = vpop.permute.xlu0 %173 }
  0x9e   :  { %vm178_vm3 = vcmp.eq.s32.totalorder %v39_v29, %v174_v46 }
 0x16e   :  { %v303_v33 = vpop.f32.mrb[0].mxu0 }
 0x16f   :  { %146 = vst [vmem:[#allocation5 + $0x8] sm:$0xff] %v303_v33  ;;  %v136_v34 = vpop.f32.mrb[1].mxu0  ;;  %v149_v35 = vsel %vm147_vm2, %v303_v33, -1e+30 }
 0x170   :  { %145 = vst [vmem:[#allocation5] sm:$0xff] %v136_v34  ;;  %152 = vmax.xlane.f32.xlu1 %v149_v35  ;;  %v148_v36 = vsel %vm147_vm2, %v136_v34, -1e+30  ;;  %v180_v48 = vsel %vm178_vm3, %v136_v34, 0.0 }
 0x174   :  { %150 = vmax.xlane.f32.xlu1 %v148_v36 }
 0x185   :  { %176 = vperm.xlu1 %345, %v171_v37  }
 0x1fd   :  { %v153_v38 = vpop.xlane.xlu1 %152 }
 0x1fe   :  { %v155_v39 = vsub.f32 %v149_v35, %v153_v38 }
 0x200   :  { %v158_v40 = vmul.f32 1.442695, %v155_v39 }
 0x201   :  { %v151_v41 = vpop.xlane.xlu1 %150 }
 0x202   :  { %346 = vpow2.f32 %v158_v40  ;;  %v154_v42 = vsub.f32 %v148_v36, %v151_v41 }
 0x204   :  { %v156_v43 = vmul.f32 1.442695, %v154_v42 }
 0x205   :  { %v177_v47 = vpop.permute.xlu1 %176 }
 0x206   :  { %348 = vpow2.f32 %v156_v43  ;;  %vm179_vm4 = vcmp.eq.s32.totalorder %v39_v29, %v177_v47 }
 0x207   :  { %v181_v49 = vsel %vm179_vm4, %v303_v33, 0.0 }
 0x20c   :  { %v347_v44 = vpop.eup %346 }
 0x20d   :  { %162 = vadd.xlane.f32.xlu1 %v347_v44 }
 0x210   :  { %v349_v45 = vpop.eup %348 }
 0x211   :  { %160 = vadd.xlane.f32.xlu0 %v349_v45 }
 0x215   :  { %182 = vadd.xlane.f32.xlu0 %v180_v48 }
 0x219   :  { %184 = vadd.xlane.f32.xlu0 %v181_v49 }
 0x21a   :  { %387 = shalt.err (!%p384_p12)
}
 0x21b   :  { %s388_s13 = scalar_lea.hbm %s519_s3, 256 }
 0x21c   :  { %p389_p13 = scmp.ne.s32.totalorder %s519_s3, %s388_s13  ;;  %p392_p0 = scmp.lt.u32.totalorder %s388_s13, %s519_s3 }
 0x21e   :  { %p394_p1 = pnand %p392_p0, %p389_p13 }
 0x220   :  { %397 = shalt.err (!%p394_p1)
}
 0x221   :  { %227 = dma.vmem_to_hbm [thread:$0]  %s222_s9, 256, %s519_s3, [#allocation4], %s427_s25, %s427_s25, %s428_s26   ;;  %v199_v5 = vld [vmem:[#allocation6] sm:$0x1] }
 0x222   :  { %s433_s3 = smov [#allocation6]  }
 0x223   :  { %s234_s20 = sshll.u32 %s433_s3, 4  ;;  %s235_s20 = int_to_ptr.vmem [resolvable:$true] %s234_s20 }
 0x224   :  { %s398_s21 = scalar_lea.vmem %s235_s20, 16  ;;  %s402_s22 = scalar_lea.vmem %s235_s20, 32 }
 0x225   :  { %p399_p2 = scmp.ne.s32.totalorder %s235_s20, %s398_s21  ;;  %p403_p3 = scmp.lt.s32.totalorder %s235_s20, %s235_s20 }
 0x226   :  { %p404_p4 = scmp.lt.s32.totalorder %s402_s22, %s398_s21 }
 0x228   :  { %p405_p5 = por %p404_p4, %p403_p3 }
 0x22a   :  { %p406_p6 = pnand %p405_p5, %p399_p2 }
 0x29a   :  { %v163_v51 = vpop.xlane.xlu1 %162 }
 0x29b   :  { %350 = vlog2.f32 %v163_v51 }
 0x29e   :  { %v161_v52 = vpop.xlane.xlu0 %160 }
 0x29f   :  { %352 = vlog2.f32 %v161_v52 }
 0x2a2   :  { %v183_v55 = vpop.xlane.xlu0 %182 }
 0x2a5   :  { %v351_v53 = vpop.eup %350 }
 0x2a6   :  { %v167_v54 = vmul.f32 0.6931472, %v351_v53  ;;  %v185_v60 = vpop.xlane.xlu0 %184 }
 0x2a8   :  { %v169_v58 = vadd.f32 %v167_v54, %v153_v38 }
 0x2a9   :  { %v353_v56 = vpop.eup %352 }
 0x2aa   :  { %v165_v57 = vmul.f32 0.6931472, %v353_v56  ;;  %v196_v62 = vsub.f32 %v169_v58, %v185_v60 }
 0x2ac   :  { %v168_v59 = vadd.f32 %v165_v57, %v151_v41 }
 0x2ae   :  { %v195_v61 = vsub.f32 %v168_v59, %v183_v55 }
 0x2b0   :  { %v200_v63 = vadd.f32 %v196_v62, %v195_v61 }
 0x2b2   :  { %v201_v0 = vrot.slane %v200_v63, 4 }
 0x2b4   :  { %v202_v1 = vadd.f32 %v201_v0, %v200_v63 }
 0x2b6   :  { %v203_v2 = vrot.slane %v202_v1, 2 }
 0x2b8   :  { %v204_v3 = vadd.f32 %v203_v2, %v202_v1 }
 0x2ba   :  { %v205_v4 = vrot.slane %v204_v3, 1 }
 0x2bc   :  { %v206_v6 = vadd.f32 %v205_v4, %v204_v3 }
 0x2be   :  { %v207_v7 = vadd.f32 %v206_v6, %v199_v5 }
 0x2c0   :  { %209 = vst.msk [vmem:[#allocation6] sm:$0x1] %vm36_vm5, %v207_v7 }
 0x2c7   :  { %v213_v8 = vld [vmem:[#allocation6] sm:$0x1] }
 0x2c8   :  { %v214_v9 = vmul.f32 0.0625, %v213_v8 }
 0x2ca   :  { %215 = vst.msk [vmem:[#allocation6] sm:$0x1] %vm36_vm5, %v214_v9 }
 0x2cb   :  { %409 = shalt.err (!%p406_p6)
}
 0x2cc   :  { %s410_s25 = scalar_lea.hbm %s520_s4, 16 }
 0x2cd   :  { %p411_p7 = scmp.ne.s32.totalorder %s520_s4, %s410_s25  ;;  %p414_p8 = scmp.lt.u32.totalorder %s410_s25, %s520_s4 }
 0x2cf   :  { %p416_p9 = pnand %p414_p8, %p411_p7 }
 0x2d1   :  { %419 = shalt.err (!%p416_p9)
}
 0x2d2   :  { %237 = dma.vmem_to_hbm [thread:$0]  %s235_s20, 16, %s520_s4, [#allocation7]  }
 0x2d3   :  { %422 = dma.done.wait [#allocation4], 256  }
 0x2d4   :  { %423 = vsyncadd [#allocation4], 4294967040 }
 0x2d5   :  { %424 = dma.done.wait [#allocation7], 16  }
 0x2d6   :  { %425 = vsyncadd [#allocation7], 4294967280 }
 0x2d7   :  { %244 = vsyncpa [#allocation3], 1 }
 0x2d8   :  { %245 = vsyncpa [#allocation4], 1 }
 0x2d9   :  { %246 = vsyncpa [#allocation7], 1 }

</bundles_post_ra>
